<compile_context>
chip_gen: v7x
topology: tpu7x:2x2x1
jax: 0.10.0
libtpu: 0.0.40
codegen_flags: <defaults>
</compile_context>

<pallas_src>
import math

import jax
import jax.numpy as jnp
from jax.experimental import pallas as pl
from jax.experimental.pallas import tpu as pltpu


def _round_up(v, m):
    return ((v + m - 1) // m) * m


# ----------------------------- Pallas kernel -------------------------------
def _sage_gcn_kernel(p_ref, xk_ref, xt_ref, wa_ref, ws_ref, o_ref, acc_ref):
    """One (graph-block g, row-tile t, k-tile k) grid step.

    p_ref  : [G, TM, TK]  sampling-count rows for this row tile / k tile
    xk_ref : [G, TK, D]   node features feeding the aggregation (K-tiled)
    xt_ref : [G, TM, D]   node features of the row tile itself (self term)
    wa_ref : [D, H]       aggregator weight (1/sample_num already folded in)
    ws_ref : [D, H]       self-transform weight (SageGCN.b)
    o_ref  : [G, TM, H]   output rows (resident across the k axis)
    acc_ref: [G, TM, D]   f32 aggregation accumulator (VMEM scratch)
    """
    k = pl.program_id(2)

    @pl.when(k == 0)
    def _():
        acc_ref[...] = jnp.zeros_like(acc_ref)

    # NeighborAggregator(aggr_method='mean'): mean over sampled neighbors ==
    # count-matrix matmul on the MXU (the 1/S scale lives in wa_ref).
    acc_ref[...] += jnp.einsum('gmn,gnd->gmd', p_ref[...], xk_ref[...],
                               preferred_element_type=jnp.float32)

    @pl.when(k == pl.num_programs(2) - 1)
    def _():
        g, tm, d = acc_ref.shape
        h = o_ref.shape[-1]
        # Flatten graphs into the M dimension so the projection matmuls fill
        # the MXU, and use two accumulated dots instead of a lane-axis concat.
        agg = acc_ref[...].reshape(g * tm, d).astype(xt_ref.dtype)
        hidden = jnp.dot(agg, wa_ref[...], preferred_element_type=jnp.float32)
        hidden += jnp.dot(xt_ref[...].reshape(g * tm, d), ws_ref[...],
                          preferred_element_type=jnp.float32)
        # aggr_hidden_method='sum' is the addition above; activation = ReLU.
        # Padded rows of x / P are zero, so their output is exactly 0,
        # matching the PyTorch zero-init + partial-write semantics.
        o_ref[...] = (jnp.maximum(hidden, 0.0)
                      .reshape(g, tm, h).astype(o_ref.dtype))


def sage_conv_pallas(x, p, w_aggr, w_self, *, out_dtype=jnp.bfloat16,
                     row_tile=256, graphs_per_step=8):
    """x: [B, N, D] (padded rows pre-zeroed), p: [B, N, N] sample counts,
    w_aggr/w_self: [D, H].  Returns [B, N, H]."""
    B, N, D_in = x.shape
    H_in = w_aggr.shape[1]
    cd = x.dtype
    in_item = jnp.dtype(cd).itemsize
    out_item = jnp.dtype(out_dtype).itemsize

    # Lane-dense feature/hidden dims; node dim padded to the row tile.
    D = _round_up(D_in, 128)
    H = _round_up(H_in, 128)
    TM = min(row_tile, _round_up(N, 128))     # multiple of 128 (and of 16)
    TK = TM                                   # K-tile over node axis
    Np = _round_up(N, TM)
    nt = Np // TM
    nk = Np // TK

    # Graphs per grid step: amortize per-step overhead for small graphs while
    # keeping the per-step block set a few MiB.
    per_graph = ((TM * TK + TK * D + TM * D) * in_item
                 + TM * H * out_item + TM * D * 4)
    G = int(max(1, min(graphs_per_step, B, (6 * 2**20) // max(per_graph, 1))))
    Bp = _round_up(B, G)
    nb = Bp // G

    # Zero-pad everything (padded rows/cols contribute exactly 0).
    x_p = jnp.zeros((Bp, Np, D), cd).at[:B, :N, :D_in].set(x)
    p_p = jnp.zeros((Bp, Np, Np), cd).at[:B, :N, :N].set(p)
    wa_p = jnp.zeros((D, H), cd).at[:D_in, :H_in].set(w_aggr)
    ws_p = jnp.zeros((D, H), cd).at[:D_in, :H_in].set(w_self)

    # VMEM budget: double-buffered streaming blocks + weights + acc scratch.
    blk = (2 * G * (TM * TK + TK * D + TM * D) * in_item   # P, xk, xt
           + 2 * 2 * D * H * in_item                       # wa, ws
           + 2 * G * TM * H * out_item                     # out
           + G * TM * D * 4)                               # f32 accumulator
    try:
        phys = pltpu.get_tpu_info().vmem_capacity_bytes
    except Exception:
        phys = 64 * 2**20                                  # conservative (v7x)
    vmem_limit = int(min(int(0.75 * phys), max(16 * 2**20, 2 * blk)))

    out = pl.pallas_call(
        _sage_gcn_kernel,
        out_shape=jax.ShapeDtypeStruct((Bp, Np, H), out_dtype),
        grid=(nb, nt, nk),
        in_specs=[
            pl.BlockSpec((G, TM, TK), lambda g, t, k: (g, t, k)),   # P counts
            pl.BlockSpec((G, TK, D), lambda g, t, k: (g, k, 0)),    # x (K-tiled)
            pl.BlockSpec((G, TM, D), lambda g, t, k: (g, t, 0)),    # x (self rows)
            pl.BlockSpec((D, H), lambda g, t, k: (0, 0)),           # w_aggr
            pl.BlockSpec((D, H), lambda g, t, k: (0, 0)),           # w_self
        ],
        out_specs=pl.BlockSpec((G, TM, H), lambda g, t, k: (g, t, 0)),
        scratch_shapes=[pltpu.VMEM((G, TM, D), jnp.float32)],
        compiler_params=pltpu.CompilerParams(
            dimension_semantics=("parallel", "parallel", "arbitrary"),
            vmem_limit_bytes=vmem_limit),
    )(p_p, x_p, x_p, wa_p, ws_p)

    return out[:B, :N, :H_in]


# ------------------------------- JAX glue -----------------------------------
def build_sampling_counts(key, adjs, masks, sample_num):
    """JAX replacement for sampling_neibor_feature, as a count matrix.

    P[b, i, j] = (# times node j was sampled for node i) — RAW counts, exact
    in bf16; the mean's 1/sample_num is folded into the aggregator weight.
    Candidates are {j : (adj + adj @ adj)[i, j] > 0} restricted to valid
    nodes; if empty the node samples itself.  Rows of padded nodes are zeroed.
    """
    # TODO(synk): original uses host-side np.random.choice; replaced with
    # jax.random.categorical (same uniform-with-replacement distribution,
    # different RNG stream), so outputs do not bit-match the torch reference.
    B, N, _ = adjs.shape

    def per_graph(k, adj, mask):
        valid = mask > 0
        adj = adj * valid[:, None] * valid[None, :]
        tmp_adj = adj + adj @ adj
        cand = (tmp_adj > 0) & valid[None, :]
        no_cand = ~jnp.any(cand, axis=1)
        cand = jnp.where(no_cand[:, None], jnp.eye(N, dtype=bool), cand)
        logits = jnp.where(cand, 0.0, -jnp.inf)            # uniform over cands
        idx = jax.random.categorical(k, logits, axis=-1,
                                     shape=(sample_num, N)).T        # [N, S]
        counts = jax.nn.one_hot(idx, N, dtype=jnp.float32).sum(axis=1)
        return counts * valid[:, None].astype(counts.dtype)

    keys = jax.random.split(key, B)
    return jax.vmap(per_graph)(keys, adjs, masks)


def kaiming_uniform(key, shape):
    # mimics torch.nn.init.kaiming_uniform_ defaults for a 2-D tensor
    fan_in = shape[1]
    bound = math.sqrt(2.0) * math.sqrt(3.0 / fan_in)
    return jax.random.uniform(key, shape, jnp.float32, -bound, bound)


def sage_gcn_forward(key, xs, adjs, masks, weight, b, sample_num,
                     compute_dtype=jnp.bfloat16, out_dtype=jnp.bfloat16):
    p_counts = build_sampling_counts(key, adjs, masks, sample_num)
    x = xs * masks[..., None]                         # pre-zero padded rows
    w_aggr = weight / float(sample_num)               # fold the mean's 1/S
    return sage_conv_pallas(x.astype(compute_dtype),
                            p_counts.astype(compute_dtype),
                            w_aggr.astype(compute_dtype),
                            b.astype(compute_dtype),
                            out_dtype=out_dtype)


# --------------------------------- main --------------------------------------
if __name__ == "__main__":
    # Small shapes; D_in and hidden_dim are multiples of 128 so all blocks are
    # lane-dense, and both graphs fit in a single fat grid step.
    B, N, D_in, H, S = 2, 64, 128, 128, 5

    key = jax.random.PRNGKey(0)
    k_x, k_adj, k_w, k_b, k_s = jax.random.split(key, 5)

    xs = jax.random.normal(k_x, (B, N, D_in), jnp.float32)

    adj_rand = (jax.random.uniform(k_adj, (B, N, N)) < 0.1).astype(jnp.float32)
    adjs = jnp.maximum(adj_rand, jnp.transpose(adj_rand, (0, 2, 1)))

    node_nums = jnp.array([N, N - 16])
    masks = (jnp.arange(N)[None, :] < node_nums[:, None]).astype(jnp.float32)
    adjs = adjs * masks[:, :, None] * masks[:, None, :]

    weight = kaiming_uniform(k_w, (D_in, H))   # NeighborAggregator.weight
    b = kaiming_uniform(k_b, (D_in, H))        # SageGCN.b

    out = sage_gcn_forward(k_s, xs, adjs, masks, weight, b, S)
    out = jax.block_until_ready(out)
    assert out.shape == (B, N, H)

    # Plain-JAX reference replicating the kernel's bf16 rounding points.
    p_ref = build_sampling_counts(k_s, adjs, masks, S)
    cd = jnp.bfloat16
    xm = (xs * masks[..., None]).astype(cd).astype(jnp.float32)
    pf = p_ref.astype(cd).astype(jnp.float32)
    wa = (weight / S).astype(cd).astype(jnp.float32)
    ws = b.astype(cd).astype(jnp.float32)
    agg = jnp.einsum('bnm,bmd->bnd', pf, xm).astype(cd).astype(jnp.float32)
    ref = jnp.maximum(agg @ wa + xm @ ws, 0.0)
    max_err = float(jnp.max(jnp.abs(out.astype(jnp.float32) - ref)))
    assert max_err < 5e-2, f"max abs err {max_err}"

    print("KERNEL_OK")
</pallas_src>

<mosaic_0001>
module attributes {stable_mosaic.version = 11 : i64} {
  func.func @_sage_gcn_kernel(%arg0: i32, %arg1: i32, %arg2: i32, %arg3: memref<2x128x128xbf16, #tpu.memory_space<vmem>>, %arg4: memref<2x128x128xbf16, #tpu.memory_space<vmem>>, %arg5: memref<2x128x128xbf16, #tpu.memory_space<vmem>>, %arg6: memref<128x128xbf16, #tpu.memory_space<vmem>>, %arg7: memref<128x128xbf16, #tpu.memory_space<vmem>>, %arg8: memref<2x128x128xbf16, #tpu.memory_space<vmem>>, %arg9: memref<2x128x128xf32, #tpu.memory_space<vmem>>) attributes {dimension_semantics = [#tpu.dimension_semantics<parallel>, #tpu.dimension_semantics<parallel>, #tpu.dimension_semantics<arbitrary>], iteration_bounds = array<i64: 1, 1, 1>, scalar_prefetch = 0 : i64, scratch_operands = 1 : i64, tpu.core_type = #tpu.core_type<tc>, window_params = [{transform_indices = @transform_0, window_bounds = array<i64: 2, 128, 128>}, {transform_indices = @transform_1, window_bounds = array<i64: 2, 128, 128>}, {transform_indices = @transform_2, window_bounds = array<i64: 2, 128, 128>}, {pipeline_mode = #tpu.pipeline_mode<synchronous>, transform_indices = @transform_3, window_bounds = array<i64: 128, 128>}, {pipeline_mode = #tpu.pipeline_mode<synchronous>, transform_indices = @transform_4, window_bounds = array<i64: 128, 128>}, {transform_indices = @transform_5, window_bounds = array<i64: 2, 128, 128>}]} {
    %c0_i32 = arith.constant 0 : i32
    %0 = arith.cmpi eq, %arg2, %c0_i32 : i32
    %1 = arith.extui %0 : i1 to i32
    %c0_i32_0 = arith.constant 0 : i32
    %2 = arith.cmpi ne, %1, %c0_i32_0 : i32
    scf.if %2 {
      %cst_14 = arith.constant 0.000000e+00 : f32
      %12 = vector.broadcast %cst_14 : f32 to vector<2x128x128xf32>
      %c0_15 = arith.constant 0 : index
      %c0_16 = arith.constant 0 : index
      %c0_17 = arith.constant 0 : index
      %13 = vector.load %arg9[%c0_15, %c0_16, %c0_17] : memref<2x128x128xf32, #tpu.memory_space<vmem>>, vector<2x128x128xf32>
      tpu.vector_store %arg9[%c0_15, %c0_16, %c0_17], %12 {strides = array<i32>} : memref<2x128x128xf32, #tpu.memory_space<vmem>>, vector<2x128x128xf32>,
    } else {
    }
    %c0 = arith.constant 0 : index
    %c0_1 = arith.constant 0 : index
    %c0_2 = arith.constant 0 : index
    %3 = vector.load %arg9[%c0, %c0_1, %c0_2] : memref<2x128x128xf32, #tpu.memory_space<vmem>>, vector<2x128x128xf32>
    %c0_3 = arith.constant 0 : index
    %c0_4 = arith.constant 0 : index
    %c0_5 = arith.constant 0 : index
    %4 = vector.load %arg3[%c0_3, %c0_4, %c0_5] : memref<2x128x128xbf16, #tpu.memory_space<vmem>>, vector<2x128x128xbf16>
    %c0_6 = arith.constant 0 : index
    %c0_7 = arith.constant 0 : index
    %c0_8 = arith.constant 0 : index
    %5 = vector.load %arg4[%c0_6, %c0_7, %c0_8] : memref<2x128x128xbf16, #tpu.memory_space<vmem>>, vector<2x128x128xbf16>
    "tpu.trace_start"() <{level = 10 : i32, message = "gmn,gnd->gmd"}> : () -> ()
    %cst = arith.constant dense<0.000000e+00> : vector<2x128x128xf32>
    %6 = tpu.matmul %4, %5, %cst {dimension_numbers = #tpu.dot_dimension_numbers<[2], [1], [1], [2], [0, 0, 0, 1, 1, 2], [0], [0]>} : vector<2x128x128xbf16>, vector<2x128x128xbf16>, vector<2x128x128xf32> -> vector<2x128x128xf32>
    "tpu.trace_stop"() : () -> ()
    %7 = arith.addf %3, %6 : vector<2x128x128xf32>
    %c0_9 = arith.constant 0 : index
    %c0_10 = arith.constant 0 : index
    %c0_11 = arith.constant 0 : index
    %8 = vector.load %arg9[%c0_9, %c0_10, %c0_11] : memref<2x128x128xf32, #tpu.memory_space<vmem>>, vector<2x128x128xf32>
    tpu.vector_store %arg9[%c0_9, %c0_10, %c0_11], %7 {strides = array<i32>} : memref<2x128x128xf32, #tpu.memory_space<vmem>>, vector<2x128x128xf32>,
    %c0_i32_12 = arith.constant 0 : i32
    %9 = arith.cmpi eq, %arg2, %c0_i32_12 : i32
    %10 = arith.extui %9 : i1 to i32
    %c0_i32_13 = arith.constant 0 : i32
    %11 = arith.cmpi ne, %10, %c0_i32_13 : i32
    scf.if %11 {
      %c0_14 = arith.constant 0 : index
      %c0_15 = arith.constant 0 : index
      %c0_16 = arith.constant 0 : index
      %12 = vector.load %arg9[%c0_14, %c0_15, %c0_16] : memref<2x128x128xf32, #tpu.memory_space<vmem>>, vector<2x128x128xf32>
      %13 = vector.shape_cast %12 : vector<2x128x128xf32> to vector<256x128xf32>
      %14 = arith.truncf %13 : vector<256x128xf32> to vector<256x128xbf16>
      %c0_17 = arith.constant 0 : index
      %c0_18 = arith.constant 0 : index
      %15 = vector.load %arg6[%c0_17, %c0_18] : memref<128x128xbf16, #tpu.memory_space<vmem>>, vector<128x128xbf16>
      %cst_19 = arith.constant dense<0.000000e+00> : vector<256x128xf32>
      %16 = tpu.matmul %14, %15, %cst_19 {dimension_numbers = #tpu.dot_dimension_numbers<[1], [0], [0], [1], [0, 0, 1, 1], [], []>} : vector<256x128xbf16>, vector<128x128xbf16>, vector<256x128xf32> -> vector<256x128xf32>
      %c0_20 = arith.constant 0 : index
      %c0_21 = arith.constant 0 : index
      %c0_22 = arith.constant 0 : index
      %17 = vector.load %arg5[%c0_20, %c0_21, %c0_22] : memref<2x128x128xbf16, #tpu.memory_space<vmem>>, vector<2x128x128xbf16>
      %18 = vector.shape_cast %17 : vector<2x128x128xbf16> to vector<256x128xbf16>
      %c0_23 = arith.constant 0 : index
      %c0_24 = arith.constant 0 : index
      %19 = vector.load %arg7[%c0_23, %c0_24] : memref<128x128xbf16, #tpu.memory_space<vmem>>, vector<128x128xbf16>
      %cst_25 = arith.constant dense<0.000000e+00> : vector<256x128xf32>
      %20 = tpu.matmul %18, %19, %cst_25 {dimension_numbers = #tpu.dot_dimension_numbers<[1], [0], [0], [1], [0, 0, 1, 1], [], []>} : vector<256x128xbf16>, vector<128x128xbf16>, vector<256x128xf32> -> vector<256x128xf32>
      %21 = arith.addf %16, %20 : vector<256x128xf32>
      %cst_26 = arith.constant 0.000000e+00 : f32
      %22 = vector.broadcast %cst_26 : f32 to vector<256x128xf32>
      %23 = arith.maximumf %21, %22 : vector<256x128xf32>
      %24 = vector.shape_cast %23 : vector<256x128xf32> to vector<2x128x128xf32>
      %25 = arith.truncf %24 : vector<2x128x128xf32> to vector<2x128x128xbf16>
      %c0_27 = arith.constant 0 : index
      %c0_28 = arith.constant 0 : index
      %c0_29 = arith.constant 0 : index
      %26 = vector.load %arg8[%c0_27, %c0_28, %c0_29] : memref<2x128x128xbf16, #tpu.memory_space<vmem>>, vector<2x128x128xbf16>
      tpu.vector_store %arg8[%c0_27, %c0_28, %c0_29], %25 {strides = array<i32>} : memref<2x128x128xbf16, #tpu.memory_space<vmem>>, vector<2x128x128xbf16>,
    } else {
    }
    return
  }
  func.func @transform_0(%arg0: i32, %arg1: i32, %arg2: i32) -> (i32, i32, i32) {
    %c0_i32 = arith.constant 0 : i32
    return %arg0, %arg1, %arg2 : i32, i32, i32
  }
  func.func @transform_1(%arg0: i32, %arg1: i32, %arg2: i32) -> (i32, i32, i32) {
    %c0_i32 = arith.constant 0 : i32
    %c0_i32_0 = arith.constant 0 : i32
    return %arg0, %arg2, %c0_i32 : i32, i32, i32
  }
  func.func @transform_2(%arg0: i32, %arg1: i32, %arg2: i32) -> (i32, i32, i32) {
    %c0_i32 = arith.constant 0 : i32
    %c0_i32_0 = arith.constant 0 : i32
    return %arg0, %arg1, %c0_i32 : i32, i32, i32
  }
  func.func @transform_3(%arg0: i32, %arg1: i32, %arg2: i32) -> (i32, i32) {
    %c0_i32 = arith.constant 0 : i32
    %c0_i32_0 = arith.constant 0 : i32
    %c0_i32_1 = arith.constant 0 : i32
    return %c0_i32, %c0_i32_0 : i32, i32
  }
  func.func @transform_4(%arg0: i32, %arg1: i32, %arg2: i32) -> (i32, i32) {
    %c0_i32 = arith.constant 0 : i32
    %c0_i32_0 = arith.constant 0 : i32
    %c0_i32_1 = arith.constant 0 : i32
    return %c0_i32, %c0_i32_0 : i32, i32
  }
  func.func @transform_5(%arg0: i32, %arg1: i32, %arg2: i32) -> (i32, i32, i32) {
    %c0_i32 = arith.constant 0 : i32
    %c0_i32_0 = arith.constant 0 : i32
    return %arg0, %arg1, %c0_i32 : i32, i32, i32
  }
}

</mosaic_0001>

<bundles_post_ra>
// kernel: tpu_custom_call.1
= control target key start
LH: loop header
LB: loop body
LE: loop exit
PB: predicated region body
PF: predicated region fallthrough
CT: control target
= control target key end

     0   :  { %10 = vsyncpa [#allocation4], 0  ;;  %s2421_s0 = inlined_call_operand.hbm [shape: bf16[2,128,128], index: 0, kind: input, shape index: {}]   ;;  %s2422_s1 = inlined_call_operand.hbm [shape: bf16[2,128,128], index: 1, kind: input, shape index: {}]   ;;  %s2423_s2 = inlined_call_operand.hbm [shape: bf16[2,128,128], index: 2, kind: input, shape index: {}]   ;;  %s2424_s3 = inlined_call_operand.hbm [shape: bf16[128,128], index: 3, kind: input, shape index: {}]   ;;  %s2425_s4 = inlined_call_operand.hbm [shape: bf16[128,128], index: 4, kind: input, shape index: {}]   ;;  %s2426_s5 = inlined_call_operand.hbm [shape: bf16[2,128,128], index: 5, kind: output, shape index: {}]  }
   0x1   :  { %11 = vsyncpa [#allocation7], 0 }
   0x2   :  { %12 = vsyncpa [#allocation10], 0 }
   0x3   :  { %13 = vsyncpa [#allocation5], 0  ;;  %s2219_s18 = smov [#allocation6]   ;;  %s2220_s20 = smov [#allocation9]  }
   0x4   :  { %s31_s19 = sshll.u32 %s2219_s18, 4  ;;  %s55_s21 = sshll.u32 %s2220_s20, 4  ;;  %s32_s19 = int_to_ptr.vmem [resolvable:$true] %s31_s19  ;;  %s2257_s21 = int_to_ptr.vmem [resolvable:$true] %s55_s21 }
   0x5   :  { %s2079_s24 = scalar_lea.hbm %s2422_s1, 2048 }
   0x6   :  { %p2080_p0 = scmp.ne.s32.totalorder %s2422_s1, %s2079_s24  ;;  %p2083_p1 = scmp.lt.u32.totalorder %s2079_s24, %s2422_s1 }
   0x8   :  { %p2085_p2 = pnand %p2083_p1, %p2080_p0 }
   0xa   :  { %2088 = shalt.err (!%p2085_p2)
}
   0xb   :  { %s2089_s29 = scalar_lea.vmem %s32_s19, 2048  ;;  %p2094_p4 = scmp.lt.s32.totalorder %s32_s19, %s32_s19 }
   0xc   :  { %p2090_p3 = scmp.ne.s32.totalorder %s32_s19, %s2089_s29  ;;  %p2095_p5 = scmp.lt.s32.totalorder %s2089_s29, %s2089_s29 }
   0xe   :  { %p2096_p6 = por %p2095_p5, %p2094_p4 }
  0x10   :  { %p2097_p7 = pnand %p2096_p6, %p2090_p3 }
  0x12   :  { %2100 = shalt.err (!%p2097_p7)
}
  0x13   :  { %s2221_s30 = smov 64   ;;  %s2222_s6 = smov 4  }
  0x14   :  { %37 = dma.hbm_to_vmem [thread:$0]  %s2422_s1, 2048, %s32_s19, [#allocation7], %s2221_s30, %s2221_s30, %s2222_s6  }
  0x15   :  { %s2101_s11 = scalar_lea.hbm %s2424_s3, 1024 }
  0x16   :  { %p2102_p8 = scmp.ne.s32.totalorder %s2424_s3, %s2101_s11  ;;  %p2105_p9 = scmp.lt.u32.totalorder %s2101_s11, %s2424_s3 }
  0x18   :  { %p2107_p10 = pnand %p2105_p9, %p2102_p8 }
  0x1a   :  { %2110 = shalt.err (!%p2107_p10)
}
  0x1b   :  { %s2111_s16 = scalar_lea.vmem %s2257_s21, 1024  ;;  %p2116_p12 = scmp.lt.s32.totalorder %s2257_s21, %s2257_s21 }
  0x1c   :  { %p2112_p11 = scmp.ne.s32.totalorder %s2257_s21, %s2111_s16  ;;  %p2117_p13 = scmp.lt.s32.totalorder %s2111_s16, %s2111_s16 }
  0x1e   :  { %p2118_p0 = por %p2117_p13, %p2116_p12 }
  0x20   :  { %p2119_p1 = pnand %p2118_p0, %p2112_p11 }
  0x22   :  { %2122 = shalt.err (!%p2119_p1)
}
  0x23   :  { %61 = dma.hbm_to_vmem [thread:$0]  %s2424_s3, 1024, %s2257_s21, [#allocation10], %s2221_s30, %s2221_s30, %s2222_s6  }
  0x24   :  { %s2223_s18 = smov [#allocation3]   ;;  %s2224_s20 = smov [#allocation8]  }
  0x25   :  { %s19_s19 = sshll.u32 %s2223_s18, 4  ;;  %s43_s22 = sshll.u32 %s2224_s20, 4  ;;  %s20_s19 = int_to_ptr.vmem [resolvable:$true] %s19_s19  ;;  %s2294_s22 = int_to_ptr.vmem [resolvable:$true] %s43_s22 }
  0x26   :  { %s2123_s25 = scalar_lea.hbm %s2421_s0, 2048 }
  0x27   :  { %p2124_p2 = scmp.ne.s32.totalorder %s2421_s0, %s2123_s25  ;;  %p2127_p3 = scmp.lt.u32.totalorder %s2123_s25, %s2421_s0 }
  0x29   :  { %p2129_p4 = pnand %p2127_p3, %p2124_p2 }
  0x2b   :  { %2132 = shalt.err (!%p2129_p4)
}
  0x2c   :  { %s2133_s3 = scalar_lea.vmem %s20_s19, 2048  ;;  %p2138_p6 = scmp.lt.s32.totalorder %s20_s19, %s20_s19 }
  0x2d   :  { %p2134_p5 = scmp.ne.s32.totalorder %s20_s19, %s2133_s3  ;;  %p2139_p7 = scmp.lt.s32.totalorder %s2133_s3, %s2133_s3 }
  0x2f   :  { %p2140_p8 = por %p2139_p7, %p2138_p6 }
  0x31   :  { %p2141_p9 = pnand %p2140_p8, %p2134_p5 }
  0x33   :  { %2144 = shalt.err (!%p2141_p9)
}
  0x34   :  { %25 = dma.hbm_to_vmem [thread:$0]  %s2421_s0, 2048, %s20_s19, [#allocation4], %s2221_s30, %s2221_s30, %s2222_s6  }
  0x35   :  { %s2145_s10 = scalar_lea.hbm %s2423_s2, 2048 }
  0x36   :  { %p2146_p10 = scmp.ne.s32.totalorder %s2423_s2, %s2145_s10  ;;  %p2149_p11 = scmp.lt.u32.totalorder %s2145_s10, %s2423_s2 }
  0x38   :  { %p2151_p12 = pnand %p2149_p11, %p2146_p10 }
  0x3a   :  { %2154 = shalt.err (!%p2151_p12)
}
  0x3b   :  { %s2155_s15 = scalar_lea.vmem %s2294_s22, 2048  ;;  %p2160_p0 = scmp.lt.s32.totalorder %s2294_s22, %s2294_s22 }
  0x3c   :  { %p2156_p13 = scmp.ne.s32.totalorder %s2294_s22, %s2155_s15  ;;  %p2161_p1 = scmp.lt.s32.totalorder %s2155_s15, %s2155_s15 }
  0x3e   :  { %p2162_p2 = por %p2161_p1, %p2160_p0 }
  0x40   :  { %p2163_p3 = pnand %p2162_p2, %p2156_p13 }
  0x42   :  { %2166 = shalt.err (!%p2163_p3)
}
  0x43   :  { %49 = dma.hbm_to_vmem [thread:$0]  %s2423_s2, 2048, %s2294_s22, [#allocation7], %s2221_s30, %s2221_s30, %s2222_s6  }
  0x44   :  { %s2225_s1 = smov [#allocation11]   ;;  %s2167_s20 = scalar_lea.hbm %s2425_s4, 1024 }
  0x45   :  { %s67_s17 = sshll.u32 %s2225_s1, 4  ;;  %p2168_p4 = scmp.ne.s32.totalorder %s2425_s4, %s2167_s20  ;;  %s68_s17 = int_to_ptr.vmem [resolvable:$true] %s67_s17 }
  0x46   :  { %p2171_p5 = scmp.lt.u32.totalorder %s2167_s20, %s2425_s4 }
  0x48   :  { %p2173_p6 = pnand %p2171_p5, %p2168_p4 }
  0x4a   :  { %2176 = shalt.err (!%p2173_p6)
}
  0x4b   :  { %s2177_s27 = scalar_lea.vmem %s68_s17, 1024  ;;  %p2182_p8 = scmp.lt.s32.totalorder %s68_s17, %s68_s17 }
  0x4c   :  { %p2178_p7 = scmp.ne.s32.totalorder %s68_s17, %s2177_s27  ;;  %p2183_p9 = scmp.lt.s32.totalorder %s2177_s27, %s2177_s27 }
  0x4e   :  { %p2184_p10 = por %p2183_p9, %p2182_p8 }
  0x50   :  { %p2185_p11 = pnand %p2184_p10, %p2178_p7 }
  0x52   :  { %2188 = shalt.err (!%p2185_p11)
}
  0x53   :  { %73 = dma.hbm_to_vmem [thread:$0]  %s2425_s4, 1024, %s68_s17, [#allocation10], %s2221_s30, %s2221_s30, %s2222_s6  }
  0x54   :  { %2211 = dma.done.wait [#allocation4], 2048  }
  0x55   :  { %2212 = vsyncadd [#allocation4], 4294965248 }
  0x56   :  { %2213 = dma.done.wait [#allocation7], 4096  }
  0x57   :  { %2214 = vsyncadd [#allocation7], 4294963200 }
  0x58   :  { %2215 = dma.done.wait [#allocation10], 2048  }
  0x59   :  { %2216 = vsyncadd [#allocation10], 4294965248  ;;  %v2015_v0 = vld [vmem:[#allocation6] sm:$0xff]   ;;  %v2016_v1 = vld [vmem:[#allocation6 + $0x8] sm:$0xff]   ;;  %s2226_s4 = smov [#allocation12]  }
  0x5a   :  { %1815 = vmatprep.subr.bf16.mxu0 %v2015_v0  ;;  %v2017_v2 = vld [vmem:[#allocation6 + $0x10] sm:$0xff]   ;;  %v2018_v3 = vld [vmem:[#allocation6 + $0x18] sm:$0xff]   ;;  %v2023_v4 = vld [vmem:[#allocation6 + $0x40] sm:$0xff]   ;;  %s1498_s28 = sshll.u32 %s2226_s4, 4  ;;  %s1499_s28 = int_to_ptr.vmem [resolvable:$true] %s1498_s28 }
  0x5b   :  { %1816 = vmatpush3.bf16.msra.mxu0 %v2015_v0  ;;  %v2024_v5 = vld [vmem:[#allocation3] sm:$0xff]   ;;  %1847 = vmatprep.subr.bf16.mxu1 %v2023_v4  ;;  %v2026_v7 = vld [vmem:[#allocation6 + $0x48] sm:$0xff]   ;;  %v2027_v8 = vld [vmem:[#allocation6 + $0x50] sm:$0xff]   ;;  %s2189_s29 = scalar_lea.vmem %s1499_s28, 2048  ;;  %p2194_p13 = scmp.lt.s32.totalorder %s1499_s28, %s1499_s28 }
  0x5c   :  { %1817 = vmatprep.subr.bf16.mxu0 %v2016_v1  ;;  %v2019_v6 = vld [vmem:[#allocation6 + $0x20] sm:$0xff]   ;;  %1848 = vmatpush3.bf16.msra.mxu1 %v2023_v4  ;;  %v2020_v9 = vld [vmem:[#allocation6 + $0x28] sm:$0xff]   ;;  %v2030_v10 = vld [vmem:[#allocation6 + $0x58] sm:$0xff]   ;;  %p2190_p12 = scmp.ne.s32.totalorder %s1499_s28, %s2189_s29  ;;  %p2195_p0 = scmp.lt.s32.totalorder %s2189_s29, %s2189_s29 }
  0x5d   :  { %1831 = vmatprep.mubr.bf16.mxu0 %v2024_v5  ;;  %1849 = vmatprep.subr.bf16.mxu1 %v2026_v7  ;;  %v2021_v11 = vld [vmem:[#allocation6 + $0x30] sm:$0xff]   ;;  %v2031_v12 = vld [vmem:[#allocation6 + $0x60] sm:$0xff]   ;;  %v2022_v13 = vld [vmem:[#allocation6 + $0x38] sm:$0xff]  }
  0x5e   :  { %v2034_v14 = vld [vmem:[#allocation6 + $0x68] sm:$0xff]   ;;  %v2039_v15 = vld [vmem:[#allocation3 + $0x40] sm:$0xff]   ;;  %v2035_v16 = vld [vmem:[#allocation6 + $0x70] sm:$0xff]   ;;  %p2196_p1 = por %p2195_p0, %p2194_p13 }
  0x5f   :  { %1818 = vmatpush3.bf16.msra.mxu0 %v2016_v1  ;;  %1863 = vmatprep.mubr.bf16.mxu1 %v2039_v15  ;;  %v2025_v17 = vld [vmem:[#allocation3 + $0x8] sm:$0xff]   ;;  %v2028_v18 = vld [vmem:[#allocation3 + $0x10] sm:$0xff]   ;;  %v2038_v19 = vld [vmem:[#allocation6 + $0x78] sm:$0xff]  }
  0x60   :  { %1819 = vmatprep.subr.bf16.mxu0 %v2017_v2  ;;  %1850 = vmatpush3.bf16.msra.mxu1 %v2026_v7  ;;  %v2048_v20 = vld [vmem:[#allocation9] sm:$0xff]   ;;  %v2050_v21 = vld [vmem:[#allocation9 + $0x8] sm:$0xff]   ;;  %v2029_v22 = vld [vmem:[#allocation3 + $0x18] sm:$0xff]   ;;  %p2197_p2 = pnand %p2196_p1, %p2190_p12 }
  0x61   :  { %1851 = vmatprep.subr.bf16.mxu1 %v2027_v8  ;;  %v2047_v23 = vld [vmem:[#allocation11] sm:$0xff]   ;;  %v2040_v25 = vld [vmem:[#allocation3 + $0x48] sm:$0xff]   ;;  %v2041_v26 = vld [vmem:[#allocation3 + $0x50] sm:$0xff]  }
  0x62   :  { %v2032_v24 = vld [vmem:[#allocation3 + $0x20] sm:$0xff]   ;;  %v2052_v27 = vld [vmem:[#allocation9 + $0x10] sm:$0xff]   ;;  %v2049_v28 = vld [vmem:[#allocation11 + $0x8] sm:$0xff]  }
  0x63   :  { %1820 = vmatpush3.bf16.msra.mxu0 %v2017_v2  ;;  %v2054_v29 = vld [vmem:[#allocation9 + $0x18] sm:$0xff]   ;;  %v2033_v30 = vld [vmem:[#allocation3 + $0x28] sm:$0xff]   ;;  %v2036_v32 = vld [vmem:[#allocation3 + $0x30] sm:$0xff]  }
  0x64   :  { %1821 = vmatprep.subr.bf16.mxu0 %v2018_v3  ;;  %1852 = vmatpush3.bf16.msra.mxu1 %v2027_v8  ;;  %v2042_v31 = vld [vmem:[#allocation3 + $0x58] sm:$0xff]   ;;  %v2043_v33 = vld [vmem:[#allocation3 + $0x60] sm:$0xff]   ;;  %v2051_v34 = vld [vmem:[#allocation11 + $0x10] sm:$0xff]  }
  0x65   :  { %1853 = vmatprep.subr.bf16.mxu1 %v2030_v10  ;;  %v2056_v35 = vld [vmem:[#allocation9 + $0x20] sm:$0xff]   ;;  %v2053_v36 = vld [vmem:[#allocation11 + $0x18] sm:$0xff]   ;;  %v2058_v37 = vld [vmem:[#allocation9 + $0x28] sm:$0xff]  }
  0x66   :  { %v2055_v38 = vld [vmem:[#allocation11 + $0x20] sm:$0xff]   ;;  %v2037_v39 = vld [vmem:[#allocation3 + $0x38] sm:$0xff]   ;;  %v2044_v40 = vld [vmem:[#allocation3 + $0x68] sm:$0xff]  }
  0x67   :  { %1822 = vmatpush3.bf16.msra.mxu0 %v2018_v3  ;;  %v2045_v41 = vld [vmem:[#allocation3 + $0x70] sm:$0xff]   ;;  %v2057_v43 = vld [vmem:[#allocation11 + $0x28] sm:$0xff]   ;;  %v2046_v45 = vld [vmem:[#allocation3 + $0x78] sm:$0xff]  }
  0x68   :  { %1823 = vmatprep.subr.bf16.mxu0 %v2019_v6  ;;  %1854 = vmatpush3.bf16.msra.mxu1 %v2030_v10  ;;  %v2060_v42 = vld [vmem:[#allocation9 + $0x30] sm:$0xff]   ;;  %v2061_v46 = vld [vmem:[#allocation11 + $0x38] sm:$0xff]   ;;  %v2063_v48 = vld [vmem:[#allocation8] sm:$0xff]  }
  0x69   :  { %1855 = vmatprep.subr.bf16.mxu1 %v2031_v12  ;;  %v2059_v44 = vld [vmem:[#allocation11 + $0x30] sm:$0xff]   ;;  %v2062_v47 = vld [vmem:[#allocation9 + $0x38] sm:$0xff]   ;;  %v2064_v49 = vld [vmem:[#allocation8 + $0x8] sm:$0xff]  }
  0x6a   :  { %v2065_v50 = vld [vmem:[#allocation8 + $0x10] sm:$0xff]   ;;  %v2066_v51 = vld [vmem:[#allocation8 + $0x18] sm:$0xff]   ;;  %v2067_v52 = vld [vmem:[#allocation8 + $0x20] sm:$0xff]  }
  0x6b   :  { %1824 = vmatpush3.bf16.msra.mxu0 %v2019_v6  ;;  %v2068_v53 = vld [vmem:[#allocation8 + $0x28] sm:$0xff]   ;;  %v2069_v54 = vld [vmem:[#allocation8 + $0x30] sm:$0xff]   ;;  %v2070_v55 = vld [vmem:[#allocation8 + $0x38] sm:$0xff]  }
  0x6c   :  { %1825 = vmatprep.subr.bf16.mxu0 %v2020_v9  ;;  %1856 = vmatpush3.bf16.msra.mxu1 %v2031_v12  ;;  %v2071_v56 = vld [vmem:[#allocation8 + $0x40] sm:$0xff]   ;;  %v2072_v57 = vld [vmem:[#allocation8 + $0x48] sm:$0xff]   ;;  %v2073_v58 = vld [vmem:[#allocation8 + $0x50] sm:$0xff]  }
  0x6d   :  { %1857 = vmatprep.subr.bf16.mxu1 %v2034_v14  ;;  %v2074_v59 = vld [vmem:[#allocation8 + $0x58] sm:$0xff]   ;;  %v2075_v60 = vld [vmem:[#allocation8 + $0x60] sm:$0xff]   ;;  %v2076_v61 = vld [vmem:[#allocation8 + $0x68] sm:$0xff]  }
  0x6e   :  { %v2077_v62 = vld [vmem:[#allocation8 + $0x70] sm:$0xff]   ;;  %v2078_v63 = vld [vmem:[#allocation8 + $0x78] sm:$0xff]  }
  0x6f   :  { %1826 = vmatpush3.bf16.msra.mxu0 %v2020_v9 }
  0x70   :  { %1827 = vmatprep.subr.bf16.mxu0 %v2021_v11  ;;  %1858 = vmatpush3.bf16.msra.mxu1 %v2034_v14 }
  0x71   :  { %1859 = vmatprep.subr.bf16.mxu1 %v2035_v16 }
  0x73   :  { %1828 = vmatpush3.bf16.msra.mxu0 %v2021_v11 }
  0x74   :  { %1829 = vmatprep.subr.bf16.mxu0 %v2022_v13  ;;  %1860 = vmatpush3.bf16.msra.mxu1 %v2035_v16 }
  0x75   :  { %1861 = vmatprep.subr.bf16.mxu1 %v2038_v19 }
  0x77   :  { %1830 = vmatpush3.bf16.msra.mxu0 %v2022_v13 }
  0x78   :  { %1927 = vmatprep.subr.bf16.mxu0 %v2048_v20  ;;  %1862 = vmatpush3.bf16.msra.mxu1 %v2038_v19 }
  0x79   :  { %1879 = vmatprep.subr.bf16.mxu1 %v2047_v23 }
  0x7a   :  { %1832 = vmatmul.mubr.bf16.vlgmr.msra.gmra.mrb[0].mxu0 %v2025_v17 }
  0x7b   :  { %1835 = vmatprep.mubr.bf16.mxu0 %v2028_v18  ;;  %1928 = vmatpush3.bf16.msra.mxu0 %v2048_v20 }
  0x7c   :  { %1929 = vmatprep.subr.bf16.mxu0 %v2050_v21  ;;  %1864 = vmatmul.mubr.bf16.vlgmr.msra.gmra.mrb[0].mxu1 %v2040_v25 }
  0x7d   :  { %1867 = vmatprep.mubr.bf16.mxu1 %v2041_v26  ;;  %1880 = vmatpush3.bf16.msra.mxu1 %v2047_v23 }
  0x7e   :  { %1881 = vmatprep.subr.bf16.mxu1 %v2049_v28 }
  0x7f   :  { %1930 = vmatpush3.bf16.msra.mxu0 %v2050_v21 }
  0x80   :  { %1931 = vmatprep.subr.bf16.mxu0 %v2052_v27 }
  0x81   :  { %1882 = vmatpush3.bf16.msra.mxu1 %v2049_v28 }
  0x82   :  { %1836 = vmatmul.mubr.bf16.gmra.mrb[4].mxu0 %v2029_v22  ;;  %1883 = vmatprep.subr.bf16.mxu1 %v2051_v34 }
  0x83   :  { %1839 = vmatprep.mubr.bf16.mxu0 %v2032_v24  ;;  %1932 = vmatpush3.bf16.msra.mxu0 %v2052_v27 }
  0x84   :  { %1933 = vmatprep.subr.bf16.mxu0 %v2054_v29  ;;  %1868 = vmatmul.mubr.bf16.gmra.mrb[4].mxu1 %v2042_v31 }
  0x85   :  { %1871 = vmatprep.mubr.bf16.mxu1 %v2043_v33  ;;  %1884 = vmatpush3.bf16.msra.mxu1 %v2051_v34 }
  0x86   :  { %1885 = vmatprep.subr.bf16.mxu1 %v2053_v36 }
  0x87   :  { %1934 = vmatpush3.bf16.msra.mxu0 %v2054_v29 }
  0x88   :  { %1935 = vmatprep.subr.bf16.mxu0 %v2056_v35 }
  0x89   :  { %1886 = vmatpush3.bf16.msra.mxu1 %v2053_v36 }
  0x8a   :  { %1840 = vmatmul.mubr.bf16.gmra.mrb[8].mxu0 %v2033_v30  ;;  %1887 = vmatprep.subr.bf16.mxu1 %v2055_v38 }
  0x8b   :  { %1843 = vmatprep.mubr.bf16.mxu0 %v2036_v32  ;;  %1936 = vmatpush3.bf16.msra.mxu0 %v2056_v35 }
  0x8c   :  { %1937 = vmatprep.subr.bf16.mxu0 %v2058_v37  ;;  %1872 = vmatmul.mubr.bf16.gmra.mrb[8].mxu1 %v2044_v40 }
  0x8d   :  { %1875 = vmatprep.mubr.bf16.mxu1 %v2045_v41  ;;  %1888 = vmatpush3.bf16.msra.mxu1 %v2055_v38 }
  0x8e   :  { %1889 = vmatprep.subr.bf16.mxu1 %v2057_v43 }
  0x8f   :  { %1938 = vmatpush3.bf16.msra.mxu0 %v2058_v37 }
  0x90   :  { %1939 = vmatprep.subr.bf16.mxu0 %v2060_v42 }
  0x91   :  { %1890 = vmatpush3.bf16.msra.mxu1 %v2057_v43 }
  0x92   :  { %1844 = vmatmul.mubr.bf16.gmra.mrb[12].mxu0 %v2037_v39  ;;  %1891 = vmatprep.subr.bf16.mxu1 %v2059_v44 }
  0x93   :  { %1940 = vmatpush3.bf16.msra.mxu0 %v2060_v42 }
  0x94   :  { %1876 = vmatmul.mubr.bf16.gmra.mrb[12].mxu1 %v2046_v45  ;;  %1941 = vmatprep.subr.bf16.mxu0 %v2062_v47 }
  0x95   :  { %1892 = vmatpush3.bf16.msra.mxu1 %v2059_v44  ;;  %1895 = vmatprep.mubr.bf16.mxu1 %v2063_v48 }
  0x96   :  { %1893 = vmatprep.subr.bf16.mxu1 %v2061_v46 }
  0x97   :  { %1942 = vmatpush3.bf16.msra.mxu0 %v2062_v47 }
  0x99   :  { %1894 = vmatpush3.bf16.msra.mxu1 %v2061_v46 }
  0x9c   :  { %1896 = vmatmul.mubr.bf16.vlgmr.msra.gmra.mrb[16].mxu1 %v2064_v49 }
  0x9d   :  { %1899 = vmatprep.mubr.bf16.mxu1 %v2065_v50 }
  0xa4   :  { %1900 = vmatmul.mubr.bf16.gmra.mrb[20].mxu1 %v2066_v51 }
  0xa5   :  { %1903 = vmatprep.mubr.bf16.mxu1 %v2067_v52 }
  0xac   :  { %1904 = vmatmul.mubr.bf16.gmra.mrb[24].mxu1 %v2068_v53 }
  0xad   :  { %1907 = vmatprep.mubr.bf16.mxu1 %v2069_v54 }
  0xb4   :  { %1908 = vmatmul.mubr.bf16.gmra.mrb[28].mxu1 %v2070_v55 }
  0xb5   :  { %1911 = vmatprep.mubr.bf16.mxu1 %v2071_v56 }
  0xbc   :  { %1912 = vmatmul.mubr.bf16.gmra.mrb[32].mxu1 %v2072_v57 }
  0xbd   :  { %1915 = vmatprep.mubr.bf16.mxu1 %v2073_v58 }
  0xc4   :  { %1916 = vmatmul.mubr.bf16.gmra.mrb[36].mxu1 %v2074_v59 }
  0xc5   :  { %1919 = vmatprep.mubr.bf16.mxu1 %v2075_v60 }
  0xcc   :  { %1920 = vmatmul.mubr.bf16.gmra.mrb[40].mxu1 %v2076_v61 }
  0xcd   :  { %1923 = vmatprep.mubr.bf16.mxu1 %v2077_v62 }
  0xd4   :  { %1924 = vmatmul.mubr.bf16.gmra.mrb[44].mxu1 %v2078_v63 }
 0x14d   :  { %v1833_v0 = vpop.f32.mrb[0].mxu0 }
 0x14e   :  { %v352_v1 = vpop.f32.mrb[1].mxu0 }
 0x14f   :  { %v1834_v2 = vpop.f32.mrb[2].mxu0  ;;  %v1865_v7 = vpop.f32.mrb[0].mxu1 }
 0x150   :  { %v708_v3 = vpack.c.bf16 %v1834_v2, %v1833_v0  ;;  %v355_v4 = vpop.f32.mrb[3].mxu0  ;;  %v545_v9 = vpop.f32.mrb[1].mxu1 }
 0x151   :  { %v707_v5 = vpack.c.bf16 %v355_v4, %v352_v1  ;;  %v1866_v11 = vpop.f32.mrb[2].mxu1 }
 0x152   :  { %v716_v14 = vpack.c.bf16 %v1866_v11, %v1865_v7  ;;  %v548_v15 = vpop.f32.mrb[3].mxu1 }
 0x153   :  { %1943 = vmatprep.mubr.bf16.mxu0 %v707_v5  ;;  %v715_v17 = vpack.c.bf16 %v548_v15, %v545_v9 }
 0x154   :  { %1944 = vmatmul.mubr.bf16.vlgmr.msra.gmra.mrb[16].mxu0 %v708_v3 }
 0x155   :  { %v1837_v6 = vpop.f32.mrb[4].mxu0 }
 0x156   :  { %v368_v8 = vpop.f32.mrb[5].mxu0 }
 0x157   :  { %v1838_v10 = vpop.f32.mrb[6].mxu0  ;;  %v1869_v19 = vpop.f32.mrb[4].mxu1 }
 0x158   :  { %v710_v12 = vpack.c.bf16 %v1838_v10, %v1837_v6  ;;  %v371_v13 = vpop.f32.mrb[7].mxu0  ;;  %v561_v21 = vpop.f32.mrb[5].mxu1 }
 0x159   :  { %v709_v16 = vpack.c.bf16 %v371_v13, %v368_v8  ;;  %v1870_v23 = vpop.f32.mrb[6].mxu1 }
 0x15a   :  { %v718_v26 = vpack.c.bf16 %v1870_v23, %v1869_v19  ;;  %v564_v27 = vpop.f32.mrb[7].mxu1 }
 0x15b   :  { %1947 = vmatprep.mubr.bf16.mxu0 %v709_v16  ;;  %v717_v29 = vpack.c.bf16 %v564_v27, %v561_v21 }
 0x15c   :  { %1948 = vmatmul.mubr.bf16.gmra.mrb[20].mxu0 %v710_v12 }
 0x15d   :  { %v1841_v18 = vpop.f32.mrb[8].mxu0 }
 0x15e   :  { %v384_v20 = vpop.f32.mrb[9].mxu0 }
 0x15f   :  { %v1842_v22 = vpop.f32.mrb[10].mxu0  ;;  %v1873_v31 = vpop.f32.mrb[8].mxu1 }
 0x160   :  { %v712_v24 = vpack.c.bf16 %v1842_v22, %v1841_v18  ;;  %v387_v25 = vpop.f32.mrb[11].mxu0  ;;  %v577_v33 = vpop.f32.mrb[9].mxu1 }
 0x161   :  { %v711_v28 = vpack.c.bf16 %v387_v25, %v384_v20  ;;  %v1874_v35 = vpop.f32.mrb[10].mxu1 }
 0x162   :  { %v720_v38 = vpack.c.bf16 %v1874_v35, %v1873_v31  ;;  %v580_v39 = vpop.f32.mrb[11].mxu1 }
 0x163   :  { %1951 = vmatprep.mubr.bf16.mxu0 %v711_v28  ;;  %v719_v41 = vpack.c.bf16 %v580_v39, %v577_v33 }
 0x164   :  { %1952 = vmatmul.mubr.bf16.gmra.mrb[24].mxu0 %v712_v24 }
 0x165   :  { %v1845_v30 = vpop.f32.mrb[12].mxu0 }
 0x166   :  { %v400_v32 = vpop.f32.mrb[13].mxu0 }
 0x167   :  { %v1846_v34 = vpop.f32.mrb[14].mxu0  ;;  %v1877_v42 = vpop.f32.mrb[12].mxu1 }
 0x168   :  { %v714_v36 = vpack.c.bf16 %v1846_v34, %v1845_v30  ;;  %v403_v37 = vpop.f32.mrb[15].mxu0  ;;  %v593_v43 = vpop.f32.mrb[13].mxu1 }
 0x169   :  { %v713_v40 = vpack.c.bf16 %v403_v37, %v400_v32  ;;  %v1878_v44 = vpop.f32.mrb[14].mxu1 }
 0x16a   :  { %v722_v45 = vpack.c.bf16 %v1878_v44, %v1877_v42  ;;  %v596_v46 = vpop.f32.mrb[15].mxu1 }
 0x16b   :  { %1955 = vmatprep.mubr.bf16.mxu0 %v713_v40  ;;  %v721_v47 = vpack.c.bf16 %v596_v46, %v593_v43 }
 0x16c   :  { %1956 = vmatmul.mubr.bf16.gmra.mrb[28].mxu0 %v714_v36 }
 0x16d   :  { %1959 = vmatprep.mubr.bf16.mxu0 %v715_v17 }
 0x16f   :  { %v1897_v48 = vpop.f32.mrb[16].mxu1 }
 0x170   :  { %v965_v49 = vpop.f32.mrb[17].mxu1 }
 0x171   :  { %v1898_v50 = vpop.f32.mrb[18].mxu1 }
 0x172   :  { %v968_v51 = vpop.f32.mrb[19].mxu1 }
 0x174   :  { %1960 = vmatmul.mubr.bf16.gmra.mrb[32].mxu0 %v716_v14 }
 0x175   :  { %1963 = vmatprep.mubr.bf16.mxu0 %v717_v29 }
 0x177   :  { %v1901_v52 = vpop.f32.mrb[20].mxu1 }
 0x178   :  { %v981_v53 = vpop.f32.mrb[21].mxu1 }
 0x179   :  { %v1902_v54 = vpop.f32.mrb[22].mxu1 }
 0x17a   :  { %v984_v55 = vpop.f32.mrb[23].mxu1 }
 0x17c   :  { %1964 = vmatmul.mubr.bf16.gmra.mrb[36].mxu0 %v718_v26 }
 0x17d   :  { %1967 = vmatprep.mubr.bf16.mxu0 %v719_v41 }
 0x17f   :  { %v1905_v56 = vpop.f32.mrb[24].mxu1 }
 0x180   :  { %v997_v57 = vpop.f32.mrb[25].mxu1 }
 0x181   :  { %v1906_v58 = vpop.f32.mrb[26].mxu1 }
 0x182   :  { %v1000_v59 = vpop.f32.mrb[27].mxu1 }
 0x184   :  { %1968 = vmatmul.mubr.bf16.gmra.mrb[40].mxu0 %v720_v38 }
 0x185   :  { %1971 = vmatprep.mubr.bf16.mxu0 %v721_v47 }
 0x187   :  { %v2346_v60 = vpop.f32.mrb[28].mxu1 }
 0x188   :  { %v2348_v61 = vpop.f32.mrb[29].mxu1 }
 0x189   :  { %v2350_v62 = vpop.f32.mrb[30].mxu1 }
 0x18a   :  { %v2352_v63 = vpop.f32.mrb[31].mxu1 }
 0x18c   :  { %1972 = vmatmul.mubr.bf16.gmra.mrb[44].mxu0 %v722_v45 }
 0x18f   :  { %v2354_v0 = vpop.f32.mrb[32].mxu1 }
 0x190   :  { %v2356_v1 = vpop.f32.mrb[33].mxu1 }
 0x191   :  { %v2358_v2 = vpop.f32.mrb[34].mxu1 }
 0x192   :  { %v2360_v3 = vpop.f32.mrb[35].mxu1 }
 0x197   :  { %v2362_v4 = vpop.f32.mrb[36].mxu1 }
 0x198   :  { %v2364_v5 = vpop.f32.mrb[37].mxu1 }
 0x199   :  { %v2366_v6 = vpop.f32.mrb[38].mxu1 }
 0x19a   :  { %v2368_v7 = vpop.f32.mrb[39].mxu1 }
 0x19f   :  { %v2370_v8 = vpop.f32.mrb[40].mxu1 }
 0x1a0   :  { %v2372_v9 = vpop.f32.mrb[41].mxu1 }
 0x1a1   :  { %v2374_v10 = vpop.f32.mrb[42].mxu1 }
 0x1a2   :  { %v2376_v11 = vpop.f32.mrb[43].mxu1 }
 0x1a7   :  { %v2378_v12 = vpop.f32.mrb[44].mxu1 }
 0x1a8   :  { %v2380_v13 = vpop.f32.mrb[45].mxu1 }
 0x1a9   :  { %v2382_v14 = vpop.f32.mrb[46].mxu1 }
 0x1aa   :  { %v2384_v15 = vpop.f32.mrb[47].mxu1 }
 0x227   :  { %v1945_v16 = vpop.f32.mrb[16].mxu0 }
 0x228   :  { %v1183_v17 = vadd.f32 %v1945_v16, %v1897_v48  ;;  %v1174_v18 = vpop.f32.mrb[17].mxu0 }
 0x229   :  { %v1175_v19 = vadd.f32 %v1174_v18, %v965_v49  ;;  %v1946_v20 = vpop.f32.mrb[18].mxu0 }
 0x22a   :  { %v1186_v21 = vadd.f32 %v1946_v20, %v1898_v50  ;;  %v1177_v22 = vpop.f32.mrb[19].mxu0  ;;  %v1303_v24 = vmax.f32 %v1183_v17, 0.0 }
 0x22b   :  { %v1178_v23 = vadd.f32 %v1177_v22, %v968_v51  ;;  %v1301_v26 = vmax.f32 %v1175_v19, 0.0 }
 0x22c   :  { %v1304_v25 = vmax.f32 %v1186_v21, 0.0 }
 0x22d   :  { %v1302_v27 = vmax.f32 %v1178_v23, 0.0 }
 0x22e   :  { %v1648_v28 = vpack.c.bf16 %v1304_v25, %v1303_v24 }
 0x22f   :  { %v1643_v29 = vpack.c.bf16 %v1302_v27, %v1301_v26  ;;  %v1949_v30 = vpop.f32.mrb[20].mxu0 }
 0x230   :  { %1720 = vst [vmem:[#allocation12 + $0x8] sm:$0xff] %v1648_v28   ;;  %v1199_v31 = vadd.f32 %v1949_v30, %v1901_v52  ;;  %v1190_v32 = vpop.f32.mrb[21].mxu0 }
 0x231   :  { %1644 = vst [vmem:[#allocation12] sm:$0xff] %v1643_v29   ;;  %v1191_v33 = vadd.f32 %v1190_v32, %v981_v53  ;;  %v1950_v34 = vpop.f32.mrb[22].mxu0 }
 0x232   :  { %v1202_v35 = vadd.f32 %v1950_v34, %v1902_v54  ;;  %v1193_v36 = vpop.f32.mrb[23].mxu0  ;;  %v1307_v38 = vmax.f32 %v1199_v31, 0.0 }
 0x233   :  { %v1194_v37 = vadd.f32 %v1193_v36, %v984_v55  ;;  %v1305_v40 = vmax.f32 %v1191_v33, 0.0 }
 0x234   :  { %v1308_v39 = vmax.f32 %v1202_v35, 0.0 }
 0x235   :  { %v1306_v41 = vmax.f32 %v1194_v37, 0.0 }
 0x236   :  { %v1658_v42 = vpack.c.bf16 %v1308_v39, %v1307_v38 }
 0x237   :  { %v1653_v43 = vpack.c.bf16 %v1306_v41, %v1305_v40  ;;  %v1953_v44 = vpop.f32.mrb[24].mxu0 }
 0x238   :  { %1722 = vst [vmem:[#allocation12 + $0x18] sm:$0xff] %v1658_v42   ;;  %v1215_v45 = vadd.f32 %v1953_v44, %v1905_v56  ;;  %v1206_v46 = vpop.f32.mrb[25].mxu0 }
 0x239   :  { %1721 = vst [vmem:[#allocation12 + $0x10] sm:$0xff] %v1653_v43   ;;  %v1207_v47 = vadd.f32 %v1206_v46, %v997_v57  ;;  %v1954_v48 = vpop.f32.mrb[26].mxu0 }
 0x23a   :  { %v1218_v49 = vadd.f32 %v1954_v48, %v1906_v58  ;;  %v1209_v50 = vpop.f32.mrb[27].mxu0  ;;  %v1311_v52 = vmax.f32 %v1215_v45, 0.0 }
 0x23b   :  { %v1210_v51 = vadd.f32 %v1209_v50, %v1000_v59  ;;  %v1309_v54 = vmax.f32 %v1207_v47, 0.0 }
 0x23c   :  { %v1312_v53 = vmax.f32 %v1218_v49, 0.0 }
 0x23d   :  { %v1310_v55 = vmax.f32 %v1210_v51, 0.0 }
 0x23e   :  { %v1668_v16 = vpack.c.bf16 %v1312_v53, %v1311_v52 }
 0x23f   :  { %v1663_v17 = vpack.c.bf16 %v1310_v55, %v1309_v54  ;;  %v1957_v18 = vpop.f32.mrb[28].mxu0 }
 0x240   :  { %1724 = vst [vmem:[#allocation12 + $0x28] sm:$0xff] %v1668_v16   ;;  %v1231_v19 = vadd.f32 %v1957_v18, %v2346_v60  ;;  %v1222_v20 = vpop.f32.mrb[29].mxu0 }
 0x241   :  { %1723 = vst [vmem:[#allocation12 + $0x20] sm:$0xff] %v1663_v17   ;;  %v1223_v56 = vadd.f32 %v1222_v20, %v2348_v61  ;;  %v1958_v21 = vpop.f32.mrb[30].mxu0 }
 0x242   :  { %v1234_v57 = vadd.f32 %v1958_v21, %v2350_v62  ;;  %v1225_v58 = vpop.f32.mrb[31].mxu0  ;;  %v1315_v22 = vmax.f32 %v1231_v19, 0.0 }
 0x243   :  { %v1226_v59 = vadd.f32 %v1225_v58, %v2352_v63  ;;  %v1313_v24 = vmax.f32 %v1223_v56, 0.0 }
 0x244   :  { %v1316_v23 = vmax.f32 %v1234_v57, 0.0 }
 0x245   :  { %v1314_v25 = vmax.f32 %v1226_v59, 0.0 }
 0x246   :  { %v1678_v26 = vpack.c.bf16 %v1316_v23, %v1315_v22 }
 0x247   :  { %v1673_v27 = vpack.c.bf16 %v1314_v25, %v1313_v24  ;;  %v1961_v28 = vpop.f32.mrb[32].mxu0 }
 0x248   :  { %1726 = vst [vmem:[#allocation12 + $0x38] sm:$0xff] %v1678_v26   ;;  %v1247_v60 = vadd.f32 %v1961_v28, %v2354_v0  ;;  %v1238_v29 = vpop.f32.mrb[33].mxu0 }
 0x249   :  { %1725 = vst [vmem:[#allocation12 + $0x30] sm:$0xff] %v1673_v27   ;;  %v1239_v61 = vadd.f32 %v1238_v29, %v2356_v1  ;;  %v1962_v30 = vpop.f32.mrb[34].mxu0 }
 0x24a   :  { %v1250_v62 = vadd.f32 %v1962_v30, %v2358_v2  ;;  %v1241_v31 = vpop.f32.mrb[35].mxu0  ;;  %v1319_v32 = vmax.f32 %v1247_v60, 0.0 }
 0x24b   :  { %v1242_v63 = vadd.f32 %v1241_v31, %v2360_v3  ;;  %v1317_v34 = vmax.f32 %v1239_v61, 0.0 }
 0x24c   :  { %v1320_v33 = vmax.f32 %v1250_v62, 0.0 }
 0x24d   :  { %v1318_v35 = vmax.f32 %v1242_v63, 0.0 }
 0x24e   :  { %v1688_v36 = vpack.c.bf16 %v1320_v33, %v1319_v32 }
 0x24f   :  { %v1683_v37 = vpack.c.bf16 %v1318_v35, %v1317_v34  ;;  %v1965_v38 = vpop.f32.mrb[36].mxu0 }
 0x250   :  { %1728 = vst [vmem:[#allocation12 + $0x48] sm:$0xff] %v1688_v36   ;;  %v1263_v0 = vadd.f32 %v1965_v38, %v2362_v4  ;;  %v1254_v39 = vpop.f32.mrb[37].mxu0 }
 0x251   :  { %1727 = vst [vmem:[#allocation12 + $0x40] sm:$0xff] %v1683_v37   ;;  %v1255_v1 = vadd.f32 %v1254_v39, %v2364_v5  ;;  %v1966_v40 = vpop.f32.mrb[38].mxu0 }
 0x252   :  { %v1266_v2 = vadd.f32 %v1966_v40, %v2366_v6  ;;  %v1257_v41 = vpop.f32.mrb[39].mxu0  ;;  %v1323_v42 = vmax.f32 %v1263_v0, 0.0 }
 0x253   :  { %v1258_v3 = vadd.f32 %v1257_v41, %v2368_v7  ;;  %v1321_v44 = vmax.f32 %v1255_v1, 0.0 }
 0x254   :  { %v1324_v43 = vmax.f32 %v1266_v2, 0.0 }
 0x255   :  { %v1322_v45 = vmax.f32 %v1258_v3, 0.0 }
 0x256   :  { %v1698_v46 = vpack.c.bf16 %v1324_v43, %v1323_v42 }
 0x257   :  { %v1693_v47 = vpack.c.bf16 %v1322_v45, %v1321_v44  ;;  %v1969_v48 = vpop.f32.mrb[40].mxu0 }
 0x258   :  { %1730 = vst [vmem:[#allocation12 + $0x58] sm:$0xff] %v1698_v46   ;;  %v1279_v4 = vadd.f32 %v1969_v48, %v2370_v8  ;;  %v1270_v49 = vpop.f32.mrb[41].mxu0 }
 0x259   :  { %1729 = vst [vmem:[#allocation12 + $0x50] sm:$0xff] %v1693_v47   ;;  %v1271_v5 = vadd.f32 %v1270_v49, %v2372_v9  ;;  %v1970_v50 = vpop.f32.mrb[42].mxu0 }
 0x25a   :  { %v1282_v6 = vadd.f32 %v1970_v50, %v2374_v10  ;;  %v1273_v51 = vpop.f32.mrb[43].mxu0  ;;  %v1327_v52 = vmax.f32 %v1279_v4, 0.0 }
 0x25b   :  { %v1274_v7 = vadd.f32 %v1273_v51, %v2376_v11  ;;  %v1325_v54 = vmax.f32 %v1271_v5, 0.0 }
 0x25c   :  { %v1328_v53 = vmax.f32 %v1282_v6, 0.0 }
 0x25d   :  { %v1326_v55 = vmax.f32 %v1274_v7, 0.0 }
 0x25e   :  { %v1708_v16 = vpack.c.bf16 %v1328_v53, %v1327_v52 }
 0x25f   :  { %v1703_v17 = vpack.c.bf16 %v1326_v55, %v1325_v54  ;;  %v1973_v18 = vpop.f32.mrb[44].mxu0 }
 0x260   :  { %1732 = vst [vmem:[#allocation12 + $0x68] sm:$0xff] %v1708_v16   ;;  %v1295_v8 = vadd.f32 %v1973_v18, %v2378_v12  ;;  %v1286_v19 = vpop.f32.mrb[45].mxu0 }
 0x261   :  { %1731 = vst [vmem:[#allocation12 + $0x60] sm:$0xff] %v1703_v17   ;;  %v1287_v9 = vadd.f32 %v1286_v19, %v2380_v13  ;;  %v1974_v20 = vpop.f32.mrb[46].mxu0 }
 0x262   :  { %v1298_v10 = vadd.f32 %v1974_v20, %v2382_v14  ;;  %v1289_v56 = vpop.f32.mrb[47].mxu0  ;;  %v1331_v21 = vmax.f32 %v1295_v8, 0.0 }
 0x263   :  { %v1290_v11 = vadd.f32 %v1289_v56, %v2384_v15  ;;  %v1329_v58 = vmax.f32 %v1287_v9, 0.0 }
 0x264   :  { %v1332_v57 = vmax.f32 %v1298_v10, 0.0 }
 0x265   :  { %v1330_v59 = vmax.f32 %v1290_v11, 0.0 }
 0x266   :  { %v1718_v22 = vpack.c.bf16 %v1332_v57, %v1331_v21 }
 0x267   :  { %v1713_v23 = vpack.c.bf16 %v1330_v59, %v1329_v58 }
 0x268   :  { %1734 = vst [vmem:[#allocation12 + $0x78] sm:$0xff] %v1718_v22  }
 0x269   :  { %1733 = vst [vmem:[#allocation12 + $0x70] sm:$0xff] %v1713_v23  }
 0x26a   :  { %2200 = shalt.err (!%p2197_p2)
}
 0x26b   :  { %s2201_s7 = scalar_lea.hbm %s2426_s5, 2048 }
 0x26c   :  { %p2202_p3 = scmp.ne.s32.totalorder %s2426_s5, %s2201_s7  ;;  %p2205_p4 = scmp.lt.u32.totalorder %s2201_s7, %s2426_s5 }
 0x26e   :  { %p2207_p5 = pnand %p2205_p4, %p2202_p3 }
 0x270   :  { %2210 = shalt.err (!%p2207_p5)
}
 0x271   :  { %1504 = dma.vmem_to_hbm [thread:$0]  %s1499_s28, 2048, %s2426_s5, [#allocation5], %s2221_s30, %s2221_s30, %s2222_s6  }
 0x272   :  { %2217 = dma.done.wait [#allocation5], 2048  }
 0x273   :  { %2218 = vsyncadd [#allocation5], 4294965248 }
 0x274   :  { %1508 = vsyncpa [#allocation4], 1 }
 0x275   :  { %1509 = vsyncpa [#allocation7], 1 }
 0x276   :  { %1510 = vsyncpa [#allocation10], 1 }
 0x277   :  { %1511 = vsyncpa [#allocation5], 1 }

</bundles_post_ra>
